<compile_context>
chip_gen: v5e
topology: v5e:2x2
jax: 0.10.0
libtpu: 0.0.40
codegen_flags: <defaults>
</compile_context>

<pallas_src>
import jax
import jax.numpy as jnp
from jax.experimental import pallas as pl
from jax.experimental.pallas import tpu as pltpu


def rnn_kernel(x_ref, wih_ref, whh_ref, b_ref, wfc_ref, bfc_ref, out_ref):
    # x_ref:  (B, T, D)  batch-first input, native layout (no wrapper reshapes)
    # wih_ref:(D, H)     input->hidden weights (pre-transposed)
    # whh_ref:(H, H)     hidden->hidden weights (pre-transposed)
    # b_ref:  (1, H)     fused bias (b_ih + b_hh)
    # wfc_ref:(1, H)     fc weight row (kept as a row for VPU reduce)
    # bfc_ref:(1, 1)     fc bias
    # out_ref:(B, 1)     sigmoid(fc(h_T))
    B, T, D = x_ref.shape
    H = whh_ref.shape[0]

    whh = whh_ref[...]

    # Hoisted input projection: one MXU pass covers every timestep's x_t @ W_ih.
    # The flatten is done in-kernel (row b*T + t), so the wrapper issues zero
    # extra XLA layout ops.
    x_flat = x_ref[...].reshape(B * T, D)
    gates = jnp.dot(x_flat, wih_ref[...],
                    preferred_element_type=jnp.float32) + b_ref[...]
    gates = gates.reshape(B, T, H)

    # Fully unrolled recurrence (T is a static Python int): only h @ W_hh and
    # tanh sit on the serial dependency chain.
    # TODO(synk): hold W_hh resident in MXU weight registers across the
    # unrolled steps (pltpu.matmul_push_rhs once + matmul_acc_lhs per step +
    # matmul_pop) to remove the repeated (32,32) weight staging from the
    # critical path.
    h = jnp.zeros((B, H), jnp.float32)
    for t in range(T):
        pre = gates[:, t, :] + jnp.dot(h, whh,
                                       preferred_element_type=jnp.float32)
        h = jnp.tanh(pre)

    # Final logit on VPU/XLU (broadcast-mul + lane reduction) instead of a
    # degenerate N=1 MXU matmul at the very end of the serial chain.
    logits = jnp.sum(h * wfc_ref[...], axis=-1, keepdims=True) + bfc_ref[...]
    out_ref[...] = jax.nn.sigmoid(logits)


def prepare_params(w_ih, w_hh, b_ih, b_hh, w_fc, b_fc):
    """One-time (model-load) weight preparation: transpose + bias fusion."""
    H = w_hh.shape[0]
    wih_t = jnp.transpose(w_ih).astype(jnp.float32)        # (D, H)
    whh_t = jnp.transpose(w_hh).astype(jnp.float32)        # (H, H)
    b = (b_ih + b_hh).reshape(1, H).astype(jnp.float32)    # (1, H) fused bias
    wfc_row = w_fc.reshape(1, H).astype(jnp.float32)       # (1, H) row for VPU reduce
    bfc = b_fc.reshape(1, 1).astype(jnp.float32)           # (1, 1)
    return (wih_t, whh_t, b, wfc_row, bfc)


def rnn_forward(x, params):
    """x: (B, T, D) -> (B, 1) float32 sigmoid probabilities."""
    wih_t, whh_t, b, wfc_row, bfc = params
    B, T, D = x.shape

    vmem = pl.BlockSpec(memory_space=pltpu.MemorySpace.VMEM)
    out = pl.pallas_call(
        rnn_kernel,
        out_shape=jax.ShapeDtypeStruct((B, 1), jnp.float32),
        in_specs=[vmem] * 6,
        out_specs=vmem,
    )(x.astype(jnp.float32), wih_t, whh_t, b, wfc_row, bfc)
    # TODO(synk): for large batches, add a batch grid axis
    # (dimension_semantics=("parallel",)) with batch tiles sized toward the MXU
    # M dimension (>=128 rows), a lane-dense (1, tileB) output layout, and an
    # explicit vmem_limit_bytes budget (v7x has only 64 MiB VMEM per TC).
    return out


def _reference(x, w_ih, w_hh, b_ih, b_hh, w_fc, b_fc):
    B, T, D = x.shape
    H = w_hh.shape[0]
    h = jnp.zeros((B, H), jnp.float32)
    for t in range(T):
        h = jnp.tanh(x[:, t, :] @ w_ih.T + b_ih + h @ w_hh.T + b_hh)
    return jax.nn.sigmoid(h @ w_fc.T + b_fc)


if __name__ == "__main__":
    B, T, D, H = 2, 8, 75, 32  # in_channels=75, hidden_dim=32 per module __init__

    key = jax.random.PRNGKey(0)
    ks = jax.random.split(key, 7)
    bound = 1.0 / jnp.sqrt(H)

    x = jax.random.normal(ks[0], (B, T, D), dtype=jnp.float32)
    w_ih = jax.random.uniform(ks[1], (H, D), jnp.float32, -bound, bound)  # torch layout
    w_hh = jax.random.uniform(ks[2], (H, H), jnp.float32, -bound, bound)
    b_ih = jax.random.uniform(ks[3], (H,), jnp.float32, -bound, bound)
    b_hh = jax.random.uniform(ks[4], (H,), jnp.float32, -bound, bound)
    w_fc = jax.random.uniform(ks[5], (1, H), jnp.float32, -bound, bound)  # torch layout
    b_fc = jax.random.uniform(ks[6], (1,), jnp.float32, -bound, bound)

    params = prepare_params(w_ih, w_hh, b_ih, b_hh, w_fc, b_fc)  # once, at load
    fwd = jax.jit(rnn_forward)
    out = fwd(x, params)
    out = jax.block_until_ready(out)

    ref = _reference(x, w_ih, w_hh, b_ih, b_hh, w_fc, b_fc)
    assert out.shape == (B, 1)
    assert jnp.allclose(out, ref, atol=1e-5, rtol=1e-5)

    print("KERNEL_OK")
</pallas_src>

<mosaic_0001>
module attributes {stable_mosaic.version = 11 : i64} {
  func.func @rnn_kernel(%arg0: memref<2x8x75xf32, #tpu.memory_space<vmem>>, %arg1: memref<75x32xf32, #tpu.memory_space<vmem>>, %arg2: memref<32x32xf32, #tpu.memory_space<vmem>>, %arg3: memref<1x32xf32, #tpu.memory_space<vmem>>, %arg4: memref<1x32xf32, #tpu.memory_space<vmem>>, %arg5: memref<1x1xf32, #tpu.memory_space<vmem>>, %arg6: memref<2x1xf32, #tpu.memory_space<vmem>>) attributes {dimension_semantics = [], scalar_prefetch = 0 : i64, scratch_operands = 0 : i64, tpu.core_type = #tpu.core_type<tc>} {
    %c0 = arith.constant 0 : index
    %c0_0 = arith.constant 0 : index
    %0 = vector.load %arg2[%c0, %c0_0] : memref<32x32xf32, #tpu.memory_space<vmem>>, vector<32x32xf32>
    %c0_1 = arith.constant 0 : index
    %c0_2 = arith.constant 0 : index
    %c0_3 = arith.constant 0 : index
    %1 = vector.load %arg0[%c0_1, %c0_2, %c0_3] : memref<2x8x75xf32, #tpu.memory_space<vmem>>, vector<2x8x75xf32>
    %2 = vector.shape_cast %1 : vector<2x8x75xf32> to vector<16x75xf32>
    %c0_4 = arith.constant 0 : index
    %c0_5 = arith.constant 0 : index
    %3 = vector.load %arg1[%c0_4, %c0_5] : memref<75x32xf32, #tpu.memory_space<vmem>>, vector<75x32xf32>
    %cst = arith.constant dense<0.000000e+00> : vector<16x32xf32>
    %4 = tpu.matmul %2, %3, %cst {dimension_numbers = #tpu.dot_dimension_numbers<[1], [0], [0], [1], [0, 0, 1, 1], [], []>} : vector<16x75xf32>, vector<75x32xf32>, vector<16x32xf32> -> vector<16x32xf32>
    %c0_6 = arith.constant 0 : index
    %c0_7 = arith.constant 0 : index
    %5 = vector.load %arg3[%c0_6, %c0_7] : memref<1x32xf32, #tpu.memory_space<vmem>>, vector<1x32xf32>
    %6 = vector.broadcast %5 : vector<1x32xf32> to vector<16x32xf32>
    %7 = arith.addf %4, %6 : vector<16x32xf32>
    %8 = vector.shape_cast %7 : vector<16x32xf32> to vector<2x8x32xf32>
    %cst_8 = arith.constant 0.000000e+00 : f32
    %9 = vector.broadcast %cst_8 : f32 to vector<2x32xf32>
    %10 = vector.extract_strided_slice %8 {offsets = [0, 0, 0], sizes = [2, 1, 32], strides = [1, 1, 1]} : vector<2x8x32xf32> to vector<2x1x32xf32>
    %11 = vector.shape_cast %10 : vector<2x1x32xf32> to vector<2x32xf32>
    %cst_9 = arith.constant dense<0.000000e+00> : vector<2x32xf32>
    %12 = tpu.matmul %9, %0, %cst_9 {dimension_numbers = #tpu.dot_dimension_numbers<[1], [0], [0], [1], [0, 0, 1, 1], [], []>} : vector<2x32xf32>, vector<32x32xf32>, vector<2x32xf32> -> vector<2x32xf32>
    %13 = arith.addf %11, %12 : vector<2x32xf32>
    %14 = math.tanh %13 : vector<2x32xf32>
    %15 = vector.extract_strided_slice %8 {offsets = [0, 1, 0], sizes = [2, 1, 32], strides = [1, 1, 1]} : vector<2x8x32xf32> to vector<2x1x32xf32>
    %16 = vector.shape_cast %15 : vector<2x1x32xf32> to vector<2x32xf32>
    %cst_10 = arith.constant dense<0.000000e+00> : vector<2x32xf32>
    %17 = tpu.matmul %14, %0, %cst_10 {dimension_numbers = #tpu.dot_dimension_numbers<[1], [0], [0], [1], [0, 0, 1, 1], [], []>} : vector<2x32xf32>, vector<32x32xf32>, vector<2x32xf32> -> vector<2x32xf32>
    %18 = arith.addf %16, %17 : vector<2x32xf32>
    %19 = math.tanh %18 : vector<2x32xf32>
    %20 = vector.extract_strided_slice %8 {offsets = [0, 2, 0], sizes = [2, 1, 32], strides = [1, 1, 1]} : vector<2x8x32xf32> to vector<2x1x32xf32>
    %21 = vector.shape_cast %20 : vector<2x1x32xf32> to vector<2x32xf32>
    %cst_11 = arith.constant dense<0.000000e+00> : vector<2x32xf32>
    %22 = tpu.matmul %19, %0, %cst_11 {dimension_numbers = #tpu.dot_dimension_numbers<[1], [0], [0], [1], [0, 0, 1, 1], [], []>} : vector<2x32xf32>, vector<32x32xf32>, vector<2x32xf32> -> vector<2x32xf32>
    %23 = arith.addf %21, %22 : vector<2x32xf32>
    %24 = math.tanh %23 : vector<2x32xf32>
    %25 = vector.extract_strided_slice %8 {offsets = [0, 3, 0], sizes = [2, 1, 32], strides = [1, 1, 1]} : vector<2x8x32xf32> to vector<2x1x32xf32>
    %26 = vector.shape_cast %25 : vector<2x1x32xf32> to vector<2x32xf32>
    %cst_12 = arith.constant dense<0.000000e+00> : vector<2x32xf32>
    %27 = tpu.matmul %24, %0, %cst_12 {dimension_numbers = #tpu.dot_dimension_numbers<[1], [0], [0], [1], [0, 0, 1, 1], [], []>} : vector<2x32xf32>, vector<32x32xf32>, vector<2x32xf32> -> vector<2x32xf32>
    %28 = arith.addf %26, %27 : vector<2x32xf32>
    %29 = math.tanh %28 : vector<2x32xf32>
    %30 = vector.extract_strided_slice %8 {offsets = [0, 4, 0], sizes = [2, 1, 32], strides = [1, 1, 1]} : vector<2x8x32xf32> to vector<2x1x32xf32>
    %31 = vector.shape_cast %30 : vector<2x1x32xf32> to vector<2x32xf32>
    %cst_13 = arith.constant dense<0.000000e+00> : vector<2x32xf32>
    %32 = tpu.matmul %29, %0, %cst_13 {dimension_numbers = #tpu.dot_dimension_numbers<[1], [0], [0], [1], [0, 0, 1, 1], [], []>} : vector<2x32xf32>, vector<32x32xf32>, vector<2x32xf32> -> vector<2x32xf32>
    %33 = arith.addf %31, %32 : vector<2x32xf32>
    %34 = math.tanh %33 : vector<2x32xf32>
    %35 = vector.extract_strided_slice %8 {offsets = [0, 5, 0], sizes = [2, 1, 32], strides = [1, 1, 1]} : vector<2x8x32xf32> to vector<2x1x32xf32>
    %36 = vector.shape_cast %35 : vector<2x1x32xf32> to vector<2x32xf32>
    %cst_14 = arith.constant dense<0.000000e+00> : vector<2x32xf32>
    %37 = tpu.matmul %34, %0, %cst_14 {dimension_numbers = #tpu.dot_dimension_numbers<[1], [0], [0], [1], [0, 0, 1, 1], [], []>} : vector<2x32xf32>, vector<32x32xf32>, vector<2x32xf32> -> vector<2x32xf32>
    %38 = arith.addf %36, %37 : vector<2x32xf32>
    %39 = math.tanh %38 : vector<2x32xf32>
    %40 = vector.extract_strided_slice %8 {offsets = [0, 6, 0], sizes = [2, 1, 32], strides = [1, 1, 1]} : vector<2x8x32xf32> to vector<2x1x32xf32>
    %41 = vector.shape_cast %40 : vector<2x1x32xf32> to vector<2x32xf32>
    %cst_15 = arith.constant dense<0.000000e+00> : vector<2x32xf32>
    %42 = tpu.matmul %39, %0, %cst_15 {dimension_numbers = #tpu.dot_dimension_numbers<[1], [0], [0], [1], [0, 0, 1, 1], [], []>} : vector<2x32xf32>, vector<32x32xf32>, vector<2x32xf32> -> vector<2x32xf32>
    %43 = arith.addf %41, %42 : vector<2x32xf32>
    %44 = math.tanh %43 : vector<2x32xf32>
    %45 = vector.extract_strided_slice %8 {offsets = [0, 7, 0], sizes = [2, 1, 32], strides = [1, 1, 1]} : vector<2x8x32xf32> to vector<2x1x32xf32>
    %46 = vector.shape_cast %45 : vector<2x1x32xf32> to vector<2x32xf32>
    %cst_16 = arith.constant dense<0.000000e+00> : vector<2x32xf32>
    %47 = tpu.matmul %44, %0, %cst_16 {dimension_numbers = #tpu.dot_dimension_numbers<[1], [0], [0], [1], [0, 0, 1, 1], [], []>} : vector<2x32xf32>, vector<32x32xf32>, vector<2x32xf32> -> vector<2x32xf32>
    %48 = arith.addf %46, %47 : vector<2x32xf32>
    %49 = math.tanh %48 : vector<2x32xf32>
    %c0_17 = arith.constant 0 : index
    %c0_18 = arith.constant 0 : index
    %50 = vector.load %arg4[%c0_17, %c0_18] : memref<1x32xf32, #tpu.memory_space<vmem>>, vector<1x32xf32>
    %51 = vector.broadcast %50 : vector<1x32xf32> to vector<2x32xf32>
    %52 = arith.mulf %49, %51 : vector<2x32xf32>
    %cst_19 = arith.constant dense<0.000000e+00> : vector<2xf32>
    %53 = vector.multi_reduction <add>, %52, %cst_19 [1] : vector<2x32xf32> to vector<2xf32>
    %54 = vector.shape_cast %53 : vector<2xf32> to vector<2x1xf32>
    %c0_20 = arith.constant 0 : index
    %c0_21 = arith.constant 0 : index
    %55 = vector.load %arg5[%c0_20, %c0_21] : memref<1x1xf32, #tpu.memory_space<vmem>>, vector<1x1xf32>
    %56 = vector.broadcast %55 : vector<1x1xf32> to vector<2x1xf32>
    %57 = arith.addf %54, %56 : vector<2x1xf32>
    %58 = arith.negf %57 : vector<2x1xf32>
    %59 = math.exp %58 : vector<2x1xf32>
    %cst_22 = arith.constant 1.000000e+00 : f32
    %60 = vector.broadcast %cst_22 : f32 to vector<2x1xf32>
    %61 = arith.addf %60, %59 : vector<2x1xf32>
    %62 = arith.divf %60, %61 : vector<2x1xf32>
    %c0_23 = arith.constant 0 : index
    %c0_24 = arith.constant 0 : index
    %63 = vector.load %arg6[%c0_23, %c0_24] : memref<2x1xf32, #tpu.memory_space<vmem>>, vector<2x1xf32>
    tpu.vector_store %arg6[%c0_23, %c0_24], %62 {strides = array<i32>} : memref<2x1xf32, #tpu.memory_space<vmem>>, vector<2x1xf32>,
    return
  }
}

</mosaic_0001>

<bundles_post_ra>
// kernel: rnn_forward.1
= control target key start
LH: loop header
LB: loop body
LE: loop exit
PB: predicated region body
PF: predicated region fallthrough
CT: control target
= control target key end

     0   :  { %vm52_vm0 = vcmask 1042432   ;;  %v488_v11 = vmov 0.0   ;;  %vm45_vm1 = vcmask 613376   ;;  %vm114_vm2 = vcmask 1041409   ;;  %s661_s1 = inlined_call_operand.vmem [shape: f32[75,32], index: 1, kind: input, shape index: {}]   ;;  %s662_s2 = inlined_call_operand.vmem [shape: f32[32,32], index: 2, kind: input, shape index: {}]   ;;  %s663_s3 = inlined_call_operand.vmem [shape: f32[1,32], index: 3, kind: input, shape index: {}]   ;;  %s664_s0 = inlined_call_operand.vmem [shape: f32[2,8,75], index: 0, kind: input, shape index: {}]   ;;  %s665_s4 = inlined_call_operand.vmem [shape: f32[1,32], index: 4, kind: input, shape index: {}]   ;;  %s666_s5 = inlined_call_operand.<no memory space> [shape: f32[1,1], index: 5, kind: input, shape index: {}]   ;;  %s667_s6 = inlined_call_operand.vmem [shape: f32[2,1], index: 6, kind: output, shape index: {}]  }
   0x1   :  { %v40_v0 = vld [vmem:[%s661_s1 + $0x48] sm:$0x7]  ;;  %v39_v1 = vld [vmem:[%s661_s1 + $0x40] sm:$0xff]  ;;  %v38_v2 = vld [vmem:[%s661_s1 + $0x38] sm:$0xff]  ;;  %vm79_vm3 = vcmask 261120   ;;  %vm372_vm4 = vcmask 261127  }
   0x2   :  { %432 = vmatpush.msk.msra.mxu0 %vm52_vm0, %v40_v0  ;;  %v536_v3 = vld [vmem:[%s662_s2 + $0x18] sm:$0xff]  ;;  %v542_v4 = vld [vmem:[%s662_s2 + $0x10] sm:$0xff]  ;;  %v550_v6 = vld [vmem:[%s662_s2 + $0x8] sm:$0xff]  ;;  %vm376_vm5 = vcmask 253952   ;;  %vm424_vm8 = vcmask 7175   ;;  %vm426_vm13 = vcmask 0  }
   0x3   :  { %95 = vmatpush.msra.mxu1 %v536_v3  ;;  %v37_v5 = vld [vmem:[%s661_s1 + $0x30] sm:$0xff]  ;;  %130 = vmatpush.msra.mxu2 %v536_v3  ;;  %v36_v7 = vld [vmem:[%s661_s1 + $0x28] sm:$0xff]  ;;  %v561_v8 = vld [vmem:[%s662_s2] sm:$0xff] }
   0x4   :  { %63 = vmatpush.msra.mxu0 %v39_v1  ;;  %164 = vmatpush.msra.mxu3 %v536_v3  ;;  %v35_v9 = vld [vmem:[%s661_s1 + $0x20] sm:$0xff]  ;;  %v34_v10 = vld [vmem:[%s661_s1 + $0x18] sm:$0xff]  ;;  %v33_v12 = vld [vmem:[%s661_s1 + $0x10] sm:$0xff] }
   0x5   :  { %96 = vmatpush.msra.mxu1 %v542_v4  ;;  %131 = vmatpush.msra.mxu2 %v542_v4  ;;  %v32_v13 = vld [vmem:[%s661_s1 + $0x8] sm:$0xff]  ;;  %v31_v14 = vld [vmem:[%s661_s1] sm:$0xff] }
   0x6   :  { %64 = vmatpush.msra.mxu0 %v38_v2  ;;  %165 = vmatpush.msra.mxu3 %v542_v4  ;;  %v29_v15 = vld [vmem:[%s664_s0] sm:$0xff]  ;;  %v30_v16 = vld [vmem:[%s664_s0 + $0x8] sm:$0xff] }
   0x7   :  { %97 = vmatpush.msra.mxu1 %v550_v6  ;;  %132 = vmatpush.msra.mxu2 %v550_v6  ;;  %v445_v18 = vld [vmem:[%s663_s3] ss:$0 sm:$0xff] }
   0x8   :  { %65 = vmatpush.msra.mxu0 %v37_v5  ;;  %166 = vmatpush.msra.mxu3 %v550_v6 }
   0x9   :  { %98 = vmatpush.msra.mxu1 %v561_v8  ;;  %133 = vmatpush.msra.mxu2 %v561_v8 }
   0xa   :  { %66 = vmatpush.msra.mxu0 %v36_v7  ;;  %99 = vmatmul.f32.vlgmr.msra.gmra.mxu1 %v488_v11 }
   0xb   :  { %167 = vmatpush.msra.mxu3 %v561_v8  ;;  %200 = vmatpush.msrb.mxu1 %v536_v3 }
   0xc   :  { %67 = vmatpush.msra.mxu0 %v35_v9  ;;  %236 = vmatpush.msrb.mxu2 %v536_v3 }
   0xd   :  { %272 = vmatpush.msrb.mxu3 %v536_v3  ;;  %201 = vmatpush.msrb.mxu1 %v542_v4 }
   0xe   :  { %68 = vmatpush.msra.mxu0 %v34_v10  ;;  %237 = vmatpush.msrb.mxu2 %v542_v4 }
   0xf   :  { %273 = vmatpush.msrb.mxu3 %v542_v4  ;;  %202 = vmatpush.msrb.mxu1 %v550_v6 }
  0x10   :  { %69 = vmatpush.msra.mxu0 %v33_v12  ;;  %238 = vmatpush.msrb.mxu2 %v550_v6 }
  0x11   :  { %274 = vmatpush.msrb.mxu3 %v550_v6  ;;  %203 = vmatpush.msrb.mxu1 %v561_v8 }
  0x12   :  { %70 = vmatpush.msra.mxu0 %v32_v13  ;;  %239 = vmatpush.msrb.mxu2 %v561_v8 }
  0x13   :  { %275 = vmatpush.msrb.mxu3 %v561_v8  ;;  %308 = vmatpush.msra.mxu1 %v536_v3 }
  0x14   :  { %71 = vmatpush.msra.mxu0 %v31_v14 }
  0x15   :  { %433 = vmatmul.msk.f32.vlgmr.msra.gmra.mxu0 %vm45_vm1, %v29_v15  ;;  %309 = vmatpush.msra.mxu1 %v542_v4 }
  0x17   :  { %310 = vmatpush.msra.mxu1 %v550_v6 }
  0x19   :  { %311 = vmatpush.msra.mxu1 %v561_v8 }
  0x1d   :  { %434 = vmatmul.msk.f32.gmra.mxu0 %vm45_vm1, %v30_v16 }
  0x87   :  { %v100_v19 = vpop.f32.mrf.mxu1 }
  0x88   :  { %v104_v21 = vrot.slane %v100_v19, 1 }
  0x92   :  { %v73_v17 = vpop.f32.mrf.mxu0 }
  0x93   :  { %v611_v20 = vadd.f32 %v445_v18, %v73_v17 }
  0x95   :  { %v107_v24 = vadd.f32 %v100_v19, %v611_v20 }
  0x9a   :  { %v76_v22 = vpop.f32.mrf.mxu0 }
  0x9b   :  { %v613_v23 = vadd.f32 %v445_v18, %v76_v22 }
  0x9d   :  { %v108_v25 = vadd.f32 %v104_v21, %v613_v23 }
  0x9f   :  { %448 = vtanh.f32 %v108_v25 }
  0xa0   :  { %450 = vtanh.f32 %v107_v24 }
  0xa5   :  { %v449_v26 = vpop.eup %448 }
  0xa6   :  { %v113_v27 = vrot.slane %v449_v26, 7  ;;  %v451_v28 = vpop.eup %450  ;;  %v11_v26 = vstv %s666_s5 }
  0xa7   :  { %12 = vst [vmem:[#allocation2] sm:$0x1] %v11_v26 }
  0xa8   :  { %v115_v29 = vsel %vm114_vm2, %v113_v27, %v451_v28 }
  0xa9   :  { %435 = vmatmul.msk.f32.vlgmr.msra.gmra.mxu2 %vm79_vm3, %v115_v29 }
  0xaa   :  { %344 = vmatpush.msra.mxu2 %v536_v3 }
  0xac   :  { %345 = vmatpush.msra.mxu2 %v542_v4 }
  0xae   :  { %346 = vmatpush.msra.mxu2 %v550_v6 }
  0xb0   :  { %347 = vmatpush.msra.mxu2 %v561_v8 }
 0x12c   :  { %v135_v30 = vpop.f32.mrf.mxu2 }
 0x12d   :  { %v139_v31 = vrot.slane %v135_v30, 7  ;;  %v143_v33 = vadd.f32 %v135_v30, %v613_v23 }
 0x12f   :  { %v142_v32 = vadd.f32 %v139_v31, %v611_v20 }
 0x131   :  { %452 = vtanh.f32 %v142_v32  ;;  %v446_v32 = vld [vmem:[%s665_s4] ss:$0 sm:$0xff] }
 0x132   :  { %454 = vtanh.f32 %v143_v33 }
 0x137   :  { %v453_v34 = vpop.eup %452 }
 0x138   :  { %v148_v35 = vrot.slane %v453_v34, 1  ;;  %v455_v36 = vpop.eup %454 }
 0x13a   :  { %v149_v37 = vsel %vm114_vm2, %v455_v36, %v148_v35 }
 0x13b   :  { %436 = vmatmul.msk.f32.vlgmr.msra.gmra.mxu3 %vm79_vm3, %v149_v37 }
 0x1be   :  { %v169_v38 = vpop.f32.mrf.mxu3 }
 0x1bf   :  { %v173_v39 = vrot.slane %v169_v38, 6  ;;  %v174_v40 = vrot.slane %v169_v38, 7 }
 0x1c1   :  { %v177_v41 = vadd.f32 %v173_v39, %v611_v20  ;;  %v178_v42 = vadd.f32 %v174_v40, %v613_v23 }
 0x1c3   :  { %456 = vtanh.f32 %v177_v41 }
 0x1c4   :  { %458 = vtanh.f32 %v178_v42 }
 0x1c9   :  { %v457_v43 = vpop.eup %456 }
 0x1ca   :  { %v459_v44 = vpop.eup %458  ;;  %v183_v45 = vrot.slane %v457_v43, 2 }
 0x1cb   :  { %v184_v46 = vrot.slane %v459_v44, 1 }
 0x1cd   :  { %v185_v47 = vsel %vm114_vm2, %v184_v46, %v183_v45 }
 0x1ce   :  { %437 = vmatmul.msk.f32.vlgmr.msrb.gmra.mxu1 %vm79_vm3, %v185_v47 }
 0x24b   :  { %v205_v48 = vpop.f32.mrf.mxu1 }
 0x24c   :  { %v209_v49 = vrot.slane %v205_v48, 5  ;;  %v210_v50 = vrot.slane %v205_v48, 6 }
 0x24e   :  { %v213_v51 = vadd.f32 %v209_v49, %v611_v20  ;;  %v214_v52 = vadd.f32 %v210_v50, %v613_v23 }
 0x250   :  { %460 = vtanh.f32 %v213_v51 }
 0x251   :  { %462 = vtanh.f32 %v214_v52 }
 0x256   :  { %v461_v53 = vpop.eup %460 }
 0x257   :  { %v463_v54 = vpop.eup %462  ;;  %v219_v55 = vrot.slane %v461_v53, 3 }
 0x258   :  { %v220_v56 = vrot.slane %v463_v54, 2 }
 0x25a   :  { %v221_v57 = vsel %vm114_vm2, %v220_v56, %v219_v55 }
 0x25b   :  { %438 = vmatmul.msk.f32.vlgmr.msrb.gmra.mxu2 %vm79_vm3, %v221_v57 }
 0x2de   :  { %v241_v58 = vpop.f32.mrf.mxu2 }
 0x2df   :  { %v245_v59 = vrot.slane %v241_v58, 4  ;;  %v246_v60 = vrot.slane %v241_v58, 5 }
 0x2e1   :  { %v249_v61 = vadd.f32 %v245_v59, %v611_v20  ;;  %v250_v62 = vadd.f32 %v246_v60, %v613_v23 }
 0x2e3   :  { %464 = vtanh.f32 %v249_v61 }
 0x2e4   :  { %466 = vtanh.f32 %v250_v62 }
 0x2e9   :  { %v465_v63 = vpop.eup %464 }
 0x2ea   :  { %v467_v0 = vpop.eup %466  ;;  %v255_v1 = vrot.slane %v465_v63, 4 }
 0x2eb   :  { %v256_v2 = vrot.slane %v467_v0, 3 }
 0x2ed   :  { %v257_v3 = vsel %vm114_vm2, %v256_v2, %v255_v1 }
 0x2ee   :  { %439 = vmatmul.msk.f32.vlgmr.msrb.gmra.mxu3 %vm79_vm3, %v257_v3 }
 0x371   :  { %v277_v4 = vpop.f32.mrf.mxu3 }
 0x372   :  { %v281_v5 = vrot.slane %v277_v4, 3  ;;  %v282_v6 = vrot.slane %v277_v4, 4 }
 0x374   :  { %v285_v7 = vadd.f32 %v281_v5, %v611_v20  ;;  %v286_v8 = vadd.f32 %v282_v6, %v613_v23 }
 0x376   :  { %468 = vtanh.f32 %v285_v7 }
 0x377   :  { %470 = vtanh.f32 %v286_v8 }
 0x37c   :  { %v469_v9 = vpop.eup %468 }
 0x37d   :  { %v471_v10 = vpop.eup %470  ;;  %v291_v11 = vrot.slane %v469_v9, 5 }
 0x37e   :  { %v292_v12 = vrot.slane %v471_v10, 4 }
 0x380   :  { %v293_v13 = vsel %vm114_vm2, %v292_v12, %v291_v11 }
 0x381   :  { %440 = vmatmul.msk.f32.vlgmr.msra.gmra.mxu1 %vm79_vm3, %v293_v13 }
 0x3fe   :  { %v313_v14 = vpop.f32.mrf.mxu1 }
 0x3ff   :  { %v317_v15 = vrot.slane %v313_v14, 2  ;;  %v318_v16 = vrot.slane %v313_v14, 3 }
 0x401   :  { %v321_v17 = vadd.f32 %v317_v15, %v611_v20  ;;  %v322_v18 = vadd.f32 %v318_v16, %v613_v23 }
 0x403   :  { %472 = vtanh.f32 %v321_v17 }
 0x404   :  { %474 = vtanh.f32 %v322_v18 }
 0x409   :  { %v473_v19 = vpop.eup %472 }
 0x40a   :  { %v475_v21 = vpop.eup %474  ;;  %v327_v22 = vrot.slane %v473_v19, 6 }
 0x40b   :  { %v328_v24 = vrot.slane %v475_v21, 5 }
 0x40d   :  { %v329_v25 = vsel %vm114_vm2, %v328_v24, %v327_v22 }
 0x40e   :  { %441 = vmatmul.msk.f32.vlgmr.msra.gmra.mxu2 %vm79_vm3, %v329_v25 }
 0x491   :  { %v349_v27 = vpop.f32.mrf.mxu2 }
 0x492   :  { %v353_v28 = vrot.slane %v349_v27, 1  ;;  %v354_v29 = vrot.slane %v349_v27, 2 }
 0x494   :  { %v357_v30 = vadd.f32 %v353_v28, %v611_v20  ;;  %v358_v31 = vadd.f32 %v354_v29, %v613_v23  ;;  %v447_v20 = vld [vmem:[#allocation2] ss:$0 sm:$0xff] }
 0x496   :  { %476 = vtanh.f32 %v357_v30 }
 0x497   :  { %478 = vtanh.f32 %v358_v31 }
 0x49c   :  { %v477_v33 = vpop.eup %476 }
 0x49d   :  { %v479_v34 = vpop.eup %478  ;;  %v365_v35 = vmul.f32 %v477_v33, %v446_v32 }
 0x49e   :  { %v366_v37 = vmul.f32 %v479_v34, %v446_v32 }
 0x49f   :  { %v373_v36 = vsel %vm372_vm4, %v365_v35, 0.0 }
 0x4a0   :  { %374 = vadd.xlane.f32.xlu0 %v373_v36  ;;  %v369_v38 = vrot.slane %v366_v37, 7 }
 0x4a2   :  { %v377_v39 = vsel %vm376_vm5, %v369_v38, 0.0 }
 0x4a8   :  { %378 = vadd.xlane.f32.xlu0 %v377_v39 }
 0x513   :  { %v375_v40 = vpop.xlane.xlu0 %374 }
 0x514   :  { %v384_v23 = vadd.f32 %v447_v20, %v375_v40 }
 0x516   :  { %v442_v41 = vmul.f32 -1.442695, %v384_v23 }
 0x518   :  { %480 = vpow2.f32 %v442_v41 }
 0x51b   :  { %v379_v42 = vpop.xlane.xlu0 %378 }
 0x51c   :  { %v385_v43 = vadd.f32 %v447_v20, %v379_v42 }
 0x51e   :  { %v481_v44 = vpop.eup %480  ;;  %v443_v45 = vmul.f32 -1.442695, %v385_v43 }
 0x51f   :  { %v392_v46 = vadd.f32 1.0, %v481_v44 }
 0x520   :  { %482 = vpow2.f32 %v443_v45 }
 0x521   :  { %484 = vrcp.f32 %v392_v46  ;;  %v405_v52 = vand.u32 2147483648, %v392_v46  ;;  %v403_v54 = vand.u32 2147483647, %v392_v46  ;;  %vm399_vm7 = vweird.f32 %v392_v46 }
 0x523   :  { %v406_v57 = vor.u32 1.1754944e-38, %v405_v52  ;;  %vm404_vm10 = vcmp.eq.f32.partialorder %v403_v54, 8.507059e+37 }
 0x526   :  { %v483_v47 = vpop.eup %482 }
 0x527   :  { %v485_v48 = vpop.eup %484  ;;  %v393_v49 = vadd.f32 1.0, %v483_v47 }
 0x528   :  { %v395_v50 = vmul.f32 %v485_v48, %v392_v46  ;;  %vm400_vm6 = vweird.f32 %v485_v48 }
 0x529   :  { %486 = vrcp.f32 %v393_v49  ;;  %vm401_vm9 = vmor %vm399_vm7, %vm400_vm6  ;;  %v420_v62 = vand.u32 2147483648, %v393_v49  ;;  %v418_v0 = vand.u32 2147483647, %v393_v49  ;;  %vm414_vm12 = vweird.f32 %v393_v49 }
 0x52a   :  { %v396_v51 = vsub.f32 1.0, %v395_v50 }
 0x52b   :  { %v421_v2 = vor.u32 1.1754944e-38, %v420_v62  ;;  %vm419_vm15 = vcmp.eq.f32.partialorder %v418_v0, 8.507059e+37 }
 0x52c   :  { %v397_v53 = vmul.f32 %v485_v48, %v396_v51 }
 0x52e   :  { %v398_v55 = vadd.f32 %v485_v48, %v397_v53 }
 0x52f   :  { %v487_v56 = vpop.eup %486 }
 0x530   :  { %v402_v58 = vsel %vm401_vm9, %v485_v48, %v398_v55  ;;  %v410_v59 = vmul.f32 %v487_v56, %v393_v49  ;;  %vm415_vm11 = vweird.f32 %v487_v56 }
 0x531   :  { %v407_v60 = vsel %vm404_vm10, %v406_v57, %v402_v58  ;;  %vm416_vm14 = vmor %vm414_vm12, %vm415_vm11 }
 0x532   :  { %425 = vst.msk [vmem:[%s667_s6 - $0x7] sm:$0x80] %vm424_vm8, %v407_v60  ;;  %v411_v61 = vsub.f32 1.0, %v410_v59 }
 0x534   :  { %v412_v63 = vmul.f32 %v487_v56, %v411_v61 }
 0x536   :  { %v413_v1 = vadd.f32 %v487_v56, %v412_v63 }
 0x538   :  { %v417_v3 = vsel %vm416_vm14, %v487_v56, %v413_v1 }
 0x539   :  { %v422_v4 = vsel %vm419_vm15, %v421_v2, %v417_v3 }
 0x53a   :  { %427 = vst.msk [vmem:[%s667_s6 + $0x1] sm:$0x1] %vm426_vm13, %v422_v4 }

</bundles_post_ra>
